<compile_context>
chip_gen: v6e
topology: v6e:2x2x1
jax: 0.10.0
libtpu: 0.0.40
codegen_flags: <defaults>
</compile_context>

<pallas_src>
import functools

import jax
import jax.numpy as jnp
import numpy as np
from jax import lax
from jax.experimental import pallas as pl
from jax.experimental.pallas import tpu as pltpu


def _round_up(a, b):
    return ((a + b - 1) // b) * b


def _vmem_capacity_bytes():
    try:
        cap = getattr(pltpu.get_tpu_info(), "vmem_capacity_bytes", None)
        if cap:
            return int(cap)
    except Exception:
        pass
    return 64 << 20  # conservative default (v7x per-TC VMEM)


# ---------------------------------------------------------------------------
# Pallas kernels
# ---------------------------------------------------------------------------
def router_kernel(x_ref, w_ref, b_ref, out_ref):
    """Switch linear + softmax over (padded) experts for one (TN, D) tile."""
    logits = jnp.dot(x_ref[...], w_ref[...],
                     preferred_element_type=jnp.float32) + b_ref[...]
    m = jnp.max(logits, axis=-1, keepdims=True)
    e = jnp.exp(logits - m)
    out_ref[...] = (e / jnp.sum(e, axis=-1, keepdims=True)).astype(out_ref.dtype)


def expert_ffn_kernel(routes_ref,                      # SMEM (E, k_pad) int32
                      x_hbm,                           # (N, D) raw HBM ref
                      w1_ref, b1_ref, w2_ref, b2_ref,  # blocked VMEM tiles
                      probs_ref,                       # (1, tk, 1) routing probs
                      out_ref,                         # (1, tk, D)
                      *scratch, tk, cast_x):
    """Per-expert FFN tile: gather rows, relu(x@W1+b1)@W2 * p, d_ff reduction."""
    if cast_x:
        x_stage, x_use, acc_ref, gsem = scratch
    else:
        x_stage, acc_ref, gsem = scratch
        x_use = x_stage

    e = pl.program_id(0)
    t = pl.program_id(1)
    h = pl.program_id(2)
    nh = pl.num_programs(2)

    # Gather this tile's routed token rows from HBM and reset the accumulator
    # on the first d_ff step; the gathered tile is reused for every d_ff step.
    @pl.when(h == 0)
    def _gather_and_init():
        acc_ref[...] = jnp.zeros_like(acc_ref)
        base = t * tk

        def _start(i, carry):
            row = routes_ref[e, base + i]
            pltpu.make_async_copy(x_hbm.at[pl.ds(row, 1), :],
                                  x_stage.at[pl.ds(i, 1), :],
                                  gsem.at[0]).start()
            return carry

        # Unrolled issue loop keeps descriptor generation off the critical path.
        lax.fori_loop(0, tk, _start, 0, unroll=8)
        # One aggregate wait: the tk row copies signal exactly tk*D*itemsize
        # bytes == one (tk, D)-shaped descriptor on the same semaphore.
        pltpu.make_async_copy(x_stage, x_stage, gsem.at[0]).wait()
        if cast_x:  # one MXU-operand cast per token tile, not per d_ff step
            x_use[...] = x_stage[...].astype(x_use.dtype)

    x = x_use[...]                                     # (tk, D) compute dtype
    w1 = w1_ref[0]                                     # (D, th)
    w2 = w2_ref[0]                                     # (th, D)
    hpre = jnp.dot(x, w1, preferred_element_type=jnp.float32) + b1_ref[0]
    hact = jnp.maximum(hpre, 0.0).astype(w2.dtype)     # ReLU in f32, cast for MXU
    acc_ref[...] += jnp.dot(hact, w2, preferred_element_type=jnp.float32)

    @pl.when(h == nh - 1)
    def _finalize():
        out_ref[0] = ((acc_ref[...] + b2_ref[0]) * probs_ref[0]).astype(out_ref.dtype)


# ---------------------------------------------------------------------------
# Wrapper (forward pass of ReverseMoE)
# ---------------------------------------------------------------------------
def reverse_moe_forward(x, params, capacity_factor=1.0, is_scale_prob=True, *,
                        ffn_compute_dtype=None, tk=None, th=None,
                        router_tile=512):
    B, S, D = x.shape
    N = B * S
    E, _, H = params["w1"].shape
    x_flat = x.reshape(N, D)

    # ---- router: switch linear + softmax, tiled over token rows ------------
    E_pad = _round_up(max(E, 128), 128)
    w_sw = jnp.pad(params["w_sw"], ((0, 0), (0, E_pad - E)))
    b_sw = jnp.pad(params["b_sw"], ((0, 0), (0, E_pad - E)),
                   constant_values=-1e30)

    tn = min(router_tile, _round_up(N, 8))
    n_pad = _round_up(_round_up(N, 8), tn)
    x_router = x_flat if n_pad == N else jnp.pad(x_flat, ((0, n_pad - N), (0, 0)))

    route_prob = pl.pallas_call(
        router_kernel,
        out_shape=jax.ShapeDtypeStruct((n_pad, E_pad), jnp.float32),
        grid=(n_pad // tn,),
        in_specs=[
            pl.BlockSpec((tn, D), lambda i: (i, 0)),    # token tile
            pl.BlockSpec((D, E_pad), lambda i: (0, 0)),  # switch weight (resident)
            pl.BlockSpec((1, E_pad), lambda i: (0, 0)),  # switch bias
        ],
        out_specs=pl.BlockSpec((tn, E_pad), lambda i: (i, 0)),
        compiler_params=pltpu.CompilerParams(
            dimension_semantics=("parallel",)),
        cost_estimate=pl.CostEstimate(
            flops=2 * n_pad * D * E_pad,
            transcendentals=n_pad * E_pad,
            bytes_accessed=(n_pad * D + D * E_pad + n_pad * E_pad) * 4),
    )(x_router, w_sw, b_sw)[:N, :E]                     # (N, E)

    # ---- top-k routing (plain JAX glue; no clean Pallas TPU top-k) ---------
    k = int(capacity_factor * N / E)
    if k <= 0:
        return jnp.zeros((B, S, D), x.dtype)
    route_prob_values, routes = lax.top_k(route_prob.T, k)          # (E, k)
    # forward value of p / p.detach() is 1 (gradient trick only)
    probs = route_prob_values if is_scale_prob else jnp.ones_like(route_prob_values)

    # ---- expert weights: cast once in the wrapper (halves streamed bytes) --
    if ffn_compute_dtype is not None:
        w1 = params["w1"].astype(ffn_compute_dtype)
        w2 = params["w2"].astype(ffn_compute_dtype)
    else:
        w1, w2 = params["w1"], params["w2"]
    # Token rows are gathered row-by-row from HBM; keep them in x.dtype (row
    # DMAs stay layout-safe) and cast once per tile inside the kernel.
    cast_x = (ffn_compute_dtype is not None
              and jnp.dtype(ffn_compute_dtype) != x.dtype)

    w_isz = jnp.dtype(w1.dtype).itemsize
    x_isz = jnp.dtype(x.dtype).itemsize
    c_isz = jnp.dtype(ffn_compute_dtype).itemsize if cast_x else 0
    out_isz = 4

    # ---- tile selection against the per-generation VMEM budget -------------
    vmem_cap = _vmem_capacity_bytes()
    budget = int(0.6 * vmem_cap)

    def _ok_th(v):
        return v >= 1 and H % v == 0 and (v == H or v % 128 == 0)

    if th is None:
        th = H
        for cand in (1024, 512, 256, 128):
            if H % cand == 0:
                th = cand
                break
    assert _ok_th(th), "d_ff tile must divide d_ff and be lane-aligned (x128) or full"

    if tk is None:
        # A large token tile amortizes weight streaming (each extra token tile
        # re-streams that expert's full W1/W2) and fills the MXU M dimension.
        tk = min(512, _round_up(k, 8))
    tk = max(8, _round_up(tk, 8))

    def _footprint(tk_, th_):
        return (2 * 2 * D * th_ * w_isz           # double-buffered W1 + W2 tiles
                + 2 * (th_ + D) * 4               # double-buffered biases
                + 2 * tk_ * D * out_isz           # double-buffered out block
                + tk_ * D * (x_isz + c_isz + 4)   # gather + cast + f32 acc scratch
                + 4 * tk_ * 4)                    # prob blocks / slack

    while _footprint(tk, th) > budget:
        w_term = 4 * D * th * w_isz
        tok_term = tk * D * (x_isz + c_isz + 4 + 2 * out_isz)
        if _ok_th(th // 2) and w_term >= tok_term:
            th //= 2
        elif tk > 8:
            tk = max(8, _round_up(tk // 2, 8))
        elif _ok_th(th // 2):
            th //= 2
        else:
            break

    # ---- pad routed-token dim so tiles are sublane aligned -----------------
    k_pad = _round_up(k, tk)
    if k_pad != k:
        routes = jnp.pad(routes, ((0, 0), (0, k_pad - k)))   # pad -> row 0
        probs = jnp.pad(probs, ((0, 0), (0, k_pad - k)))     # pad -> prob 0
    routes = routes.astype(jnp.int32)
    probs3 = probs.astype(jnp.float32).reshape(E, k_pad, 1)

    n_t = k_pad // tk
    n_h = H // th
    b1_3 = params["b1"][:, None, :]                           # (E, 1, H)
    b2_3 = params["b2"][:, None, :]                           # (E, 1, D)

    cost = pl.CostEstimate(
        flops=4 * E * k_pad * D * H,
        transcendentals=0,
        bytes_accessed=(E * n_t * 2 * D * H * w_isz           # streamed weights
                        + E * k_pad * D * x_isz               # row gather
                        + E * k_pad * D * out_isz))           # writeback

    vmem_limit = int(min(int(0.75 * vmem_cap),
                         max(32 << 20, _footprint(tk, th) + (8 << 20))))

    scratch = [pltpu.VMEM((tk, D), x.dtype)]                  # gathered token rows
    if cast_x:
        scratch.append(pltpu.VMEM((tk, D), ffn_compute_dtype))  # MXU-operand tile
    scratch += [pltpu.VMEM((tk, D), jnp.float32),             # f32 acc over d_ff
                pltpu.SemaphoreType.DMA((1,))]                 # gather DMA sem

    expert_out = pl.pallas_call(
        functools.partial(expert_ffn_kernel, tk=tk, cast_x=cast_x),
        out_shape=jax.ShapeDtypeStruct((E, k_pad, D), jnp.float32),
        grid_spec=pltpu.PrefetchScalarGridSpec(
            num_scalar_prefetch=1,                              # routes -> SMEM
            grid=(E, n_t, n_h),
            in_specs=[
                pl.BlockSpec(memory_space=pl.ANY),                       # x (HBM)
                pl.BlockSpec((1, D, th), lambda e, t, h, r: (e, 0, h)),  # W1 tile
                pl.BlockSpec((1, 1, th), lambda e, t, h, r: (e, 0, h)),  # b1 tile
                pl.BlockSpec((1, th, D), lambda e, t, h, r: (e, h, 0)),  # W2 tile
                pl.BlockSpec((1, 1, D), lambda e, t, h, r: (e, 0, 0)),   # b2
                pl.BlockSpec((1, tk, 1), lambda e, t, h, r: (e, t, 0)),  # probs
            ],
            out_specs=pl.BlockSpec((1, tk, D), lambda e, t, h, r: (e, t, 0)),
            scratch_shapes=scratch),
        compiler_params=pltpu.CompilerParams(
            dimension_semantics=("parallel", "parallel", "arbitrary"),
            vmem_limit_bytes=vmem_limit),
        cost_estimate=cost,
    )(routes, x_flat, w1, b1_3, w2, b2_3, probs3)

    # ---- epilogue: scatter-add routed contributions back to token rows -----
    final = jnp.zeros((N, D), jnp.float32).at[routes.reshape(-1)].add(
        expert_out.reshape(E * k_pad, D))
    return final.astype(x.dtype).reshape(B, S, D)


# ---------------------------------------------------------------------------
# Pure-JAX reference for correctness checking
# ---------------------------------------------------------------------------
def reverse_moe_reference(x, params, capacity_factor=1.0):
    B, S, D = x.shape
    N = B * S
    E, _, H = params["w1"].shape
    x_flat = x.reshape(N, D)
    logits = jnp.dot(x_flat, params["w_sw"], precision="highest") + params["b_sw"]
    route_prob = jax.nn.softmax(logits, -1)
    k = int(capacity_factor * N / E)
    vals, routes = lax.top_k(route_prob.T, k)
    xin = jnp.take(x_flat, routes, axis=0)                      # (E, k, D)
    h = jnp.maximum(jnp.einsum("ekd,edh->ekh", xin, params["w1"],
                               precision="highest")
                    + params["b1"][:, None, :], 0.0)
    y = jnp.einsum("ekh,ehd->ekd", h, params["w2"],
                   precision="highest") + params["b2"][:, None, :]
    y = y * vals[:, :, None]
    final = jnp.zeros((N, D), jnp.float32)
    final = final.at[routes.reshape(-1)].add(y.reshape(-1, D))
    return final.astype(x.dtype).reshape(B, S, D)


# ---------------------------------------------------------------------------
# Deterministic parameter init + run
# ---------------------------------------------------------------------------
def init_params(key, d_model, d_ff, n_experts):
    ks = jax.random.split(key, 6)
    return {
        "w_sw": jax.random.normal(ks[0], (d_model, n_experts), jnp.float32) * 0.1,
        "b_sw": jax.random.normal(ks[1], (1, n_experts), jnp.float32) * 0.1,
        "w1": jax.random.normal(ks[2], (n_experts, d_model, d_ff), jnp.float32)
              / np.sqrt(d_model),
        "b1": jax.random.normal(ks[3], (n_experts, d_ff), jnp.float32) * 0.1,
        "w2": jax.random.normal(ks[4], (n_experts, d_ff, d_model), jnp.float32)
              / np.sqrt(d_ff),
        "b2": jax.random.normal(ks[5], (n_experts, d_model), jnp.float32) * 0.1,
    }


if __name__ == "__main__":
    def run_case(B, S, D, E, H, capacity_factor, *, ffn_compute_dtype=None,
                 tk=None, th=None, rtol=1e-4, atol=1e-4, seed=0):
        key = jax.random.PRNGKey(seed)
        kx, kp = jax.random.split(key)
        x = jax.random.normal(kx, (B, S, D), jnp.float32)
        params = init_params(kp, D, H, E)
        out = jax.block_until_ready(
            reverse_moe_forward(x, params, capacity_factor, True,
                                ffn_compute_dtype=ffn_compute_dtype,
                                tk=tk, th=th))
        ref = jax.block_until_ready(
            reverse_moe_reference(x, params, capacity_factor))
        np.testing.assert_allclose(np.asarray(out), np.asarray(ref),
                                   rtol=rtol, atol=atol)

    # 1) base config (single tile per axis): B=2, S=8, D=32, E=4, H=64, k=4.
    run_case(2, 8, 32, 4, 64, 1.0)
    # 2) multi-tile path: 2 token tiles x 2 d_ff tiles per expert, exercising
    #    the accumulator init/finalize and the per-tile aggregate-wait gather.
    run_case(2, 16, 32, 2, 256, 1.0, tk=8, th=128, seed=1)
    # 3) bf16 MXU operands in the expert FFN (wrapper-cast weights, one-time
    #    x-tile cast, f32 accumulate), looser tolerance.
    run_case(2, 8, 32, 4, 64, 1.0, ffn_compute_dtype=jnp.bfloat16,
             rtol=5e-2, atol=5e-2)

    print("KERNEL_OK")
</pallas_src>

<mosaic_0001>
module attributes {stable_mosaic.version = 11 : i64} {
  func.func @router_kernel(%arg0: i32, %arg1: memref<16x32xf32, #tpu.memory_space<vmem>>, %arg2: memref<32x128xf32, #tpu.memory_space<vmem>>, %arg3: memref<1x128xf32, #tpu.memory_space<vmem>>, %arg4: memref<16x128xf32, #tpu.memory_space<vmem>>) attributes {dimension_semantics = [#tpu.dimension_semantics<parallel>], iteration_bounds = array<i64: 1>, scalar_prefetch = 0 : i64, scratch_operands = 0 : i64, tpu.core_type = #tpu.core_type<tc>, window_params = [{transform_indices = @transform_0, window_bounds = array<i64: 16, 32>}, {pipeline_mode = #tpu.pipeline_mode<synchronous>, transform_indices = @transform_1, window_bounds = array<i64: 32, 128>}, {pipeline_mode = #tpu.pipeline_mode<synchronous>, transform_indices = @transform_2, window_bounds = array<i64: 1, 128>}, {transform_indices = @transform_3, window_bounds = array<i64: 16, 128>}]} {
    %c0 = arith.constant 0 : index
    %c0_0 = arith.constant 0 : index
    %0 = vector.load %arg1[%c0, %c0_0] : memref<16x32xf32, #tpu.memory_space<vmem>>, vector<16x32xf32>
    %c0_1 = arith.constant 0 : index
    %c0_2 = arith.constant 0 : index
    %1 = vector.load %arg2[%c0_1, %c0_2] : memref<32x128xf32, #tpu.memory_space<vmem>>, vector<32x128xf32>
    %cst = arith.constant dense<0.000000e+00> : vector<16x128xf32>
    %2 = tpu.matmul %0, %1, %cst {dimension_numbers = #tpu.dot_dimension_numbers<[1], [0], [0], [1], [0, 0, 1, 1], [], []>} : vector<16x32xf32>, vector<32x128xf32>, vector<16x128xf32> -> vector<16x128xf32>
    %c0_3 = arith.constant 0 : index
    %c0_4 = arith.constant 0 : index
    %3 = vector.load %arg3[%c0_3, %c0_4] : memref<1x128xf32, #tpu.memory_space<vmem>>, vector<1x128xf32>
    %4 = vector.broadcast %3 : vector<1x128xf32> to vector<16x128xf32>
    %5 = arith.addf %2, %4 : vector<16x128xf32>
    %cst_5 = arith.constant dense<0xFF800000> : vector<16xf32>
    %6 = vector.multi_reduction <maximumf>, %5, %cst_5 [1] : vector<16x128xf32> to vector<16xf32>
    %7 = vector.shape_cast %6 : vector<16xf32> to vector<16x1xf32>
    %8 = vector.broadcast %7 : vector<16x1xf32> to vector<16x128xf32>
    %9 = arith.subf %5, %8 : vector<16x128xf32>
    %10 = math.exp %9 : vector<16x128xf32>
    %cst_6 = arith.constant dense<0.000000e+00> : vector<16xf32>
    %11 = vector.multi_reduction <add>, %10, %cst_6 [1] : vector<16x128xf32> to vector<16xf32>
    %12 = vector.shape_cast %11 : vector<16xf32> to vector<16x1xf32>
    %13 = vector.broadcast %12 : vector<16x1xf32> to vector<16x128xf32>
    %14 = arith.divf %10, %13 : vector<16x128xf32>
    %c0_7 = arith.constant 0 : index
    %c0_8 = arith.constant 0 : index
    %15 = vector.load %arg4[%c0_7, %c0_8] : memref<16x128xf32, #tpu.memory_space<vmem>>, vector<16x128xf32>
    tpu.vector_store %arg4[%c0_7, %c0_8], %14 {strides = array<i32>} : memref<16x128xf32, #tpu.memory_space<vmem>>, vector<16x128xf32>,
    return
  }
  func.func @transform_0(%arg0: i32) -> (i32, i32) {
    %c0_i32 = arith.constant 0 : i32
    %c0_i32_0 = arith.constant 0 : i32
    return %arg0, %c0_i32 : i32, i32
  }
  func.func @transform_1(%arg0: i32) -> (i32, i32) {
    %c0_i32 = arith.constant 0 : i32
    %c0_i32_0 = arith.constant 0 : i32
    %c0_i32_1 = arith.constant 0 : i32
    return %c0_i32, %c0_i32_0 : i32, i32
  }
  func.func @transform_2(%arg0: i32) -> (i32, i32) {
    %c0_i32 = arith.constant 0 : i32
    %c0_i32_0 = arith.constant 0 : i32
    %c0_i32_1 = arith.constant 0 : i32
    return %c0_i32, %c0_i32_0 : i32, i32
  }
  func.func @transform_3(%arg0: i32) -> (i32, i32) {
    %c0_i32 = arith.constant 0 : i32
    %c0_i32_0 = arith.constant 0 : i32
    return %arg0, %c0_i32 : i32, i32
  }
}

</mosaic_0001>

<bundles_post_ra>
// kernel: tpu_custom_call.1
= control target key start
LH: loop header
LB: loop body
LE: loop exit
PB: predicated region body
PF: predicated region fallthrough
CT: control target
= control target key end

     0   :  { %8 = vsyncpa [#allocation3], 0  ;;  %s323_s0 = inlined_call_operand.hbm [shape: f32[16,32], index: 0, kind: input, shape index: {}]   ;;  %s324_s1 = inlined_call_operand.hbm [shape: f32[32,128], index: 1, kind: input, shape index: {}]   ;;  %s325_s2 = inlined_call_operand.vmem [shape: f32[1,128], index: 2, kind: input, shape index: {}]   ;;  %s326_s3 = inlined_call_operand.hbm [shape: f32[16,128], index: 3, kind: output, shape index: {}]  }
   0x1   :  { %9 = vsyncpa [#allocation6], 0 }
   0x2   :  { %10 = vsyncpa [#allocation4], 0  ;;  %s275_s12 = smov [#allocation2]  }
   0x3   :  { %s16_s13 = sshll.u32 %s275_s12, 4  ;;  %s17_s13 = int_to_ptr.vmem [resolvable:$true] %s16_s13 }
   0x4   :  { %s217_s14 = scalar_lea.vmem %s17_s13, 256  ;;  %p222_p1 = scmp.lt.s32.totalorder %s17_s13, %s17_s13 }
   0x5   :  { %p218_p0 = scmp.ne.s32.totalorder %s17_s13, %s217_s14  ;;  %p223_p2 = scmp.lt.s32.totalorder %s217_s14, %s217_s14 }
   0x7   :  { %p224_p3 = por %p223_p2, %p222_p1 }
   0x9   :  { %p225_p4 = pnand %p224_p3, %p218_p0 }
   0xb   :  { %228 = shalt.err (!%p225_p4)
}
   0xc   :  { %s276_s15 = smov 128   ;;  %s277_s16 = smov 8  }
   0xd   :  { %22 = dma.hbm_to_vmem [thread:$0]  %s323_s0, 256, %s17_s13, [#allocation3], %s276_s15, %s276_s15, %s277_s16  }
   0xe   :  { %s278_s19 = smov [#allocation5]  }
   0xf   :  { %s28_s20 = sshll.u32 %s278_s19, 4  ;;  %s29_s20 = int_to_ptr.vmem [resolvable:$true] %s28_s20 }
  0x10   :  { %s237_s21 = scalar_lea.vmem %s29_s20, 512  ;;  %p242_p6 = scmp.lt.s32.totalorder %s29_s20, %s29_s20 }
  0x11   :  { %p238_p5 = scmp.ne.s32.totalorder %s29_s20, %s237_s21  ;;  %p243_p7 = scmp.lt.s32.totalorder %s237_s21, %s237_s21 }
  0x13   :  { %p244_p8 = por %p243_p7, %p242_p6 }
  0x15   :  { %p245_p9 = pnand %p244_p8, %p238_p5 }
  0x17   :  { %248 = shalt.err (!%p245_p9)
}
  0x18   :  { %34 = dma.hbm_to_vmem [thread:$0]  %s324_s1, 512, %s29_s20, [#allocation6], %s276_s15, %s276_s15, %s277_s16  }
  0x19   :  { %269 = dma.done.wait [#allocation3], 256  }
  0x1a   :  { %270 = vsyncadd [#allocation3], 4294967040 }
  0x1b   :  { %271 = dma.done.wait [#allocation6], 512  }
  0x1c   :  { %272 = vsyncadd [#allocation6], 4294966784  ;;  %vm56_vm0 = vcmask 261120   ;;  %v48_v0 = vld [vmem:[#allocation5 + $0x18] sm:$0xff]  ;;  %v47_v1 = vld [vmem:[#allocation5 + $0x10] sm:$0xff] }
  0x1d   :  { %185 = vmatprep.subr.mxu0 %v48_v0  ;;  %v43_v2 = vld [vmem:[#allocation2] sm:$0xff]  ;;  %v46_v3 = vld [vmem:[#allocation5 + $0x8] sm:$0xff]  ;;  %v45_v4 = vld [vmem:[#allocation5] sm:$0xff] }
  0x1e   :  { %186 = vmatpush3.msra.mxu0 %v48_v0  ;;  %193 = vmatprep.mubr.msk.f32.mxu0 %vm56_vm0, %v43_v2  ;;  %v44_v5 = vld [vmem:[#allocation2 + $0x8] sm:$0xff]  ;;  %v176_v7 = vld [vmem:[%s325_s2] ss:$0 sm:$0xff]  ;;  %s279_s2 = smov [#allocation7]  }
  0x1f   :  { %187 = vmatprep.subr.mxu0 %v47_v1  ;;  %s163_s24 = sshll.u32 %s279_s2, 4  ;;  %s164_s24 = int_to_ptr.vmem [resolvable:$true] %s163_s24 }
  0x20   :  { %188 = vmatpush3.msra.mxu0 %v47_v1  ;;  %s249_s25 = scalar_lea.vmem %s164_s24, 256  ;;  %p254_p11 = scmp.lt.s32.totalorder %s164_s24, %s164_s24 }
  0x21   :  { %189 = vmatprep.subr.mxu0 %v46_v3  ;;  %p250_p10 = scmp.ne.s32.totalorder %s164_s24, %s249_s25  ;;  %p255_p12 = scmp.lt.s32.totalorder %s249_s25, %s249_s25 }
  0x22   :  { %190 = vmatpush3.msra.mxu0 %v46_v3 }
  0x23   :  { %191 = vmatprep.subr.mxu0 %v45_v4  ;;  %p256_p13 = por %p255_p12, %p254_p11 }
  0x24   :  { %192 = vmatpush3.msra.mxu0 %v45_v4 }
  0x25   :  { %194 = vmatmul.mubr.msk.f32.vlgmr.msra.gmra.mxu0 %vm56_vm0, %v44_v5  ;;  %p257_p0 = pnand %p256_p13, %p250_p10 }
  0xe5   :  { %v195_v6 = vpop.f32.mrf.mxu0 }
  0xe6   :  { %v135_v10 = vadd.f32 %v195_v6, %v176_v7 }
  0xe7   :  { %v129_v8 = vpop.f32.mrf.mxu0 }
  0xe8   :  { %v130_v9 = vadd.f32 %v176_v7, %v129_v8 }
  0xea   :  { %138 = vmax.xlane.f32.xlu0 %v130_v9 }
  0xee   :  { %140 = vmax.xlane.f32.xlu0 %v135_v10 }
 0x173   :  { %v139_v11 = vpop.xlane.xlu0 %138 }
 0x174   :  { %v142_v12 = vsub.f32 %v130_v9, %v139_v11 }
 0x176   :  { %v144_v13 = vmul.f32 1.442695, %v142_v12 }
 0x177   :  { %v141_v14 = vpop.xlane.xlu0 %140 }
 0x178   :  { %201 = vpow2.f32 %v144_v13  ;;  %v143_v15 = vsub.f32 %v135_v10, %v141_v14 }
 0x17a   :  { %v146_v16 = vmul.f32 1.442695, %v143_v15 }
 0x17c   :  { %203 = vpow2.f32 %v146_v16 }
 0x185   :  { %v202_v17 = vpop.eup %201 }
 0x186   :  { %148 = vadd.xlane.f32.xlu1 %v202_v17 }
 0x189   :  { %v204_v18 = vpop.eup %203 }
 0x18a   :  { %150 = vadd.xlane.f32.xlu1 %v204_v18 }
 0x20f   :  { %v149_v19 = vpop.xlane.xlu1 %148 }
 0x210   :  { %205 = vrcp.f32 %v149_v19 }
 0x213   :  { %v151_v20 = vpop.xlane.xlu1 %150 }
 0x214   :  { %207 = vrcp.f32 %v151_v20 }
 0x21d   :  { %v206_v21 = vpop.eup %205 }
 0x21e   :  { %v153_v22 = vmul.f32 %v206_v21, %v202_v17 }
 0x220   :  { %156 = vst [vmem:[#allocation7] sm:$0xff] %v153_v22 }
 0x221   :  { %v208_v23 = vpop.eup %207 }
 0x222   :  { %v155_v24 = vmul.f32 %v208_v23, %v204_v18 }
 0x224   :  { %157 = vst [vmem:[#allocation7 + $0x8] sm:$0xff] %v155_v24 }
 0x225   :  { %260 = shalt.err (!%p257_p0)
}
 0x226   :  { %169 = dma.vmem_to_hbm [thread:$0]  %s164_s24, 256, %s326_s3, [#allocation4], %s276_s15, %s276_s15, %s277_s16  }
 0x227   :  { %273 = dma.done.wait [#allocation4], 256  }
 0x228   :  { %274 = vsyncadd [#allocation4], 4294967040 }
 0x229   :  { %173 = vsyncpa [#allocation3], 1 }
 0x22a   :  { %174 = vsyncpa [#allocation6], 1 }
 0x22b   :  { %175 = vsyncpa [#allocation4], 1 }

</bundles_post_ra>
